<compile_context>
chip_gen: v6e
topology: v6e:2x2x1
jax: 0.10.0
libtpu: 0.0.40
codegen_flags: <defaults>
</compile_context>

<pallas_src>
import functools
import numpy as np
import jax
import jax.numpy as jnp
from jax.experimental import pallas as pl
from jax.experimental.pallas import tpu as pltpu

N_DIVS = 16  # sedenion


# ----------------------------------------------------------------------------
# Sedenion algebra (Cayley-Dickson construction), deterministic.
# TODO(synk): exact basis/sign convention of the original ModelConv2D is not in
# the provided snippet; the standard Cayley-Dickson sedenion table is used.
# ----------------------------------------------------------------------------
def cayley_dickson_table(n):
    """e_i * e_j = sgn[i, j] * e_{idx[i, j]} for a 2^k-dim CD algebra."""
    if n == 1:
        return np.array([[0]], dtype=np.int32), np.array([[1]], dtype=np.int32)
    h = n // 2
    idx_h, sgn_h = cayley_dickson_table(h)
    idx = np.zeros((n, n), dtype=np.int32)
    sgn = np.zeros((n, n), dtype=np.int32)
    for i in range(n):
        for j in range(n):
            ia, ib = i % h, i // h
            ja, jb = j % h, j // h
            if ib == 0 and jb == 0:            # (a,0)(c,0) = (a c, 0)
                idx[i, j] = idx_h[ia, ja]
                sgn[i, j] = sgn_h[ia, ja]
            elif ib == 0 and jb == 1:          # (a,0)(0,d) = (0, d a)
                idx[i, j] = h + idx_h[ja, ia]
                sgn[i, j] = sgn_h[ja, ia]
            elif ib == 1 and jb == 0:          # (0,b)(c,0) = (0, b c*)
                conj = 1 if ja == 0 else -1
                idx[i, j] = h + idx_h[ia, ja]
                sgn[i, j] = sgn_h[ia, ja] * conj
            else:                              # (0,b)(0,d) = (-d* b, 0)
                conj = 1 if ja == 0 else -1
                idx[i, j] = idx_h[ja, ia]
                sgn[i, j] = -conj * sgn_h[ja, ia]
    return idx, sgn


def build_sedenion_weight(w_comp):
    """w_comp: (N_DIVS, featmaps, c_per_comp) ->
    per-output-component weight blocks of shape (N_DIVS, featmaps, N_DIVS*c_per_comp)
    such that conv output component i (featmaps channels) = W[i] @ x_allchannels.
    Contiguous in (component, featmap) order, so the (16*f, C_in) view used by
    the kernel is a free reshape (no transpose in the forward)."""
    idx, sgn = cayley_dickson_table(N_DIVS)
    n_divs, f, cpc = w_comp.shape
    W = np.zeros((n_divs, f, n_divs * cpc), dtype=np.float32)
    for k in range(n_divs):          # weight component
        for j in range(n_divs):      # input component
            i = int(idx[k, j])       # output component
            W[i, :, j * cpc:(j + 1) * cpc] = sgn[k, j] * w_comp[k]
    return jnp.asarray(W)


def compute_padding(out_size, in_size, kernel, stride):
    return max(int(np.ceil(((out_size - 1) * stride + kernel - in_size) / 2)), 0)


def _pick_hw_tile(hw_pad, c_in, c_res_total, c_out,
                  budget_bytes=24 * 1024 * 1024):
    """Largest 128-multiple tile dividing hw_pad whose double-buffered blocks
    fit the VMEM budget (sized for v7x's 32 MiB scoped default)."""
    for t in (1024, 512, 256, 128):
        if t <= hw_pad and hw_pad % t == 0:
            per_step = 2 * (c_in * t * 2 + c_res_total * t * 4 + c_out * t * 4)
            if per_step <= budget_bytes:
                return t
    return 128


# ----------------------------------------------------------------------------
# Pallas kernel: one (16f, C_in)@(C_in, hw_tile) MXU matmul per step, fused
# with the component-interleaved channel write.
#   x_ref : (C_in, hw_tile)              bf16  -- stride-2 sampled activations
#   w_ref : (16f, C_in)                  bf16  -- full weight, VMEM-resident
#   r_ref : (C_res, hw_tile)             f32   -- residual slab (one bulk DMA)
#   o_ref : (16*(f+c_res), hw_tile)      f32   -- final interleaved slab
# ----------------------------------------------------------------------------
def _proj_shortcut_kernel(x_ref, w_ref, r_ref, o_ref, *, f, c_res):
    y = jnp.dot(w_ref[...], x_ref[...],
                preferred_element_type=jnp.float32)          # (16f, hw_tile)
    step = f + c_res
    for i in range(N_DIVS):                                  # static slices
        o_ref[i * step:i * step + f, :] = \
            y[i * f:(i + 1) * f, :].astype(o_ref.dtype)
        o_ref[i * step + f:(i + 1) * step, :] = \
            r_ref[i * c_res:(i + 1) * c_res, :].astype(o_ref.dtype)


def projection_shortcut_forward(x_pair, W_comp16, compute_dtype=jnp.bfloat16):
    input_I, residual_R = x_pair
    N, C_in, H_in, W_in = input_I.shape
    _, C_res, H_out, W_out = residual_R.shape
    n_divs, f, k_in = W_comp16.shape
    assert n_divs == N_DIVS and k_in == C_in
    assert C_in % N_DIVS == 0 and C_res % N_DIVS == 0
    c_res = C_res // N_DIVS
    C_out = N_DIVS * (f + c_res)
    HW = H_out * W_out
    out_dtype = residual_R.dtype

    # --- XLA glue: stride-2 sampling of the 1x1 conv (one fused pass). ------
    # TODO(synk): in-kernel strided-W sampling would need an XLU lane gather;
    # the wrapper slice+cast is the cheaper option, so it stays in XLA.
    pH = compute_padding(H_out, H_in, 1, 2)
    pW = compute_padding(W_out, W_in, 1, 2)
    x = input_I
    if pH or pW:                                   # skip pad entirely when 0
        x = jnp.pad(x, ((0, 0), (0, 0), (pH, pH), (pW, pW)))
    assert x.shape[2] >= 2 * H_out - 1 and x.shape[3] >= 2 * W_out - 1
    x = x[:, :, 0:2 * H_out:2, 0:2 * W_out:2]      # (N, C_in, H_out, W_out)
    x2 = x.reshape(N, C_in, HW).astype(compute_dtype)
    r2 = residual_R.reshape(N, C_res, HW)

    # --- Lane-dense HW: pad to a multiple of 128, slice off after the call. -
    HW_pad = ((HW + 127) // 128) * 128
    if HW_pad != HW:
        x2 = jnp.pad(x2, ((0, 0), (0, 0), (0, HW_pad - HW)))
        r2 = jnp.pad(r2, ((0, 0), (0, 0), (0, HW_pad - HW)))

    w2 = W_comp16.reshape(N_DIVS * f, C_in).astype(compute_dtype)  # free view

    hw_tile = _pick_hw_tile(HW_pad, C_in, C_res, C_out)
    grid = (N, HW_pad // hw_tile)

    cost = pl.CostEstimate(
        flops=2 * N * (N_DIVS * f) * C_in * HW_pad,
        transcendentals=0,
        bytes_accessed=(x2.size * jnp.dtype(compute_dtype).itemsize
                        + w2.size * jnp.dtype(compute_dtype).itemsize
                        + r2.size * jnp.dtype(residual_R.dtype).itemsize
                        + N * C_out * HW_pad * jnp.dtype(out_dtype).itemsize),
    )

    kernel = functools.partial(_proj_shortcut_kernel, f=f, c_res=c_res)
    out = pl.pallas_call(
        kernel,
        out_shape=jax.ShapeDtypeStruct((N, C_out, HW_pad), out_dtype),
        grid=grid,
        in_specs=[
            # activations: per (batch, hw-tile) block
            pl.BlockSpec((None, C_in, hw_tile), lambda b, t: (b, 0, t)),
            # weight: constant index_map -> loaded once, VMEM-resident
            pl.BlockSpec((N_DIVS * f, C_in), lambda b, t: (0, 0)),
            # residual: one bulk slab per step (sublane-full DMA)
            pl.BlockSpec((None, C_res, hw_tile), lambda b, t: (b, 0, t)),
        ],
        out_specs=pl.BlockSpec((None, C_out, hw_tile), lambda b, t: (b, 0, t)),
        compiler_params=pltpu.CompilerParams(
            dimension_semantics=("parallel", "parallel"),
            vmem_limit_bytes=32 * 1024 * 1024,   # safe on v5e/v6e/v7x
        ),
        cost_estimate=cost,
    )(x2, w2, r2)

    if HW_pad != HW:
        out = out[:, :, :HW]
    # Free contiguous reshape == concatenate_m([conv(input_I), residual_R]).
    # TODO(synk): convArgs of the original repo is unavailable; bias=False assumed.
    return out.reshape(N, C_out, H_out, W_out)


# ----------------------------------------------------------------------------
# Pure-JAX reference (same bf16-rounded operands, f32 math) for verification.
# ----------------------------------------------------------------------------
def reference_forward(x_pair, W_comp16, compute_dtype=jnp.bfloat16):
    input_I, residual_R = x_pair
    N, C_in, H_in, W_in = input_I.shape
    _, C_res, H_out, W_out = residual_R.shape
    f = W_comp16.shape[1]
    c = C_res // N_DIVS
    pH = compute_padding(H_out, H_in, 1, 2)
    pW = compute_padding(W_out, W_in, 1, 2)
    x = input_I
    if pH or pW:
        x = jnp.pad(x, ((0, 0), (0, 0), (pH, pH), (pW, pW)))
    x = x[:, :, 0:2 * H_out:2, 0:2 * W_out:2]
    x = x.astype(compute_dtype).astype(jnp.float32)
    Wb = W_comp16.astype(compute_dtype).astype(jnp.float32).reshape(N_DIVS * f, C_in)
    e1 = jnp.einsum("oc,nchw->nohw", Wb, x, precision=jax.lax.Precision.HIGHEST)
    parts = []
    for i in range(N_DIVS):              # concatenate_m([e1, residual_R])
        parts.append(e1[:, i * f:(i + 1) * f])
        parts.append(residual_R[:, i * c:(i + 1) * c])
    return jnp.concatenate(parts, axis=1)


if __name__ == "__main__":
    key = jax.random.PRNGKey(0)
    k1, k2, k3 = jax.random.split(key, 3)

    # Small shapes consistent with the module (sedenion => channels % 16 == 0)
    input_shape = (2, 16, 16, 16)      # N, C_in, H_in, W_in
    residual_shape = (2, 32, 8, 8)     # N, C_res, H_out, W_out
    featmaps = 4                       # per-component conv feature maps

    input_I = jax.random.normal(k1, input_shape, jnp.float32)
    residual_R = jax.random.normal(k2, residual_shape, jnp.float32)

    w_comp = np.asarray(
        jax.random.normal(k3, (N_DIVS, featmaps, input_shape[1] // N_DIVS),
                          jnp.float32)) * 0.1
    W_comp16 = build_sedenion_weight(w_comp)   # (16, featmaps, C_in), f32

    fwd = jax.jit(projection_shortcut_forward)
    out = fwd([input_I, residual_R], W_comp16)
    out = jax.block_until_ready(out)

    expected_channels = residual_shape[1] + featmaps * N_DIVS
    assert out.shape == (input_shape[0], expected_channels,
                         residual_shape[2], residual_shape[3]), out.shape
    assert bool(jnp.all(jnp.isfinite(out)))

    ref = reference_forward([input_I, residual_R], W_comp16)
    max_err = float(jnp.max(jnp.abs(out - ref.astype(out.dtype))))
    assert max_err < 1e-3, max_err

    print("KERNEL_OK")
</pallas_src>

<mosaic_0001>
module attributes {stable_mosaic.version = 11 : i64} {
  func.func @_proj_shortcut_kernel(%arg0: i32, %arg1: i32, %arg2: memref<1x16x128xbf16, #tpu.memory_space<vmem>>, %arg3: memref<64x16xbf16, #tpu.memory_space<vmem>>, %arg4: memref<1x32x128xf32, #tpu.memory_space<vmem>>, %arg5: memref<1x96x128xf32, #tpu.memory_space<vmem>>) attributes {dimension_semantics = [#tpu.dimension_semantics<parallel>, #tpu.dimension_semantics<parallel>], iteration_bounds = array<i64: 2, 1>, scalar_prefetch = 0 : i64, scratch_operands = 0 : i64, tpu.core_type = #tpu.core_type<tc>, window_params = [{transform_indices = @transform_0, window_bounds = array<i64: 1, 16, 128>}, {pipeline_mode = #tpu.pipeline_mode<synchronous>, transform_indices = @transform_1, window_bounds = array<i64: 64, 16>}, {transform_indices = @transform_2, window_bounds = array<i64: 1, 32, 128>}, {transform_indices = @transform_3, window_bounds = array<i64: 1, 96, 128>}]} {
    %c0 = arith.constant 0 : index
    %c0_0 = arith.constant 0 : index
    %0 = vector.load %arg3[%c0, %c0_0] : memref<64x16xbf16, #tpu.memory_space<vmem>>, vector<64x16xbf16>
    %c0_1 = arith.constant 0 : index
    %c0_2 = arith.constant 0 : index
    %c0_3 = arith.constant 0 : index
    %1 = vector.load %arg2[%c0_1, %c0_2, %c0_3] : memref<1x16x128xbf16, #tpu.memory_space<vmem>>, vector<1x16x128xbf16>
    %2 = vector.shape_cast %1 : vector<1x16x128xbf16> to vector<16x128xbf16>
    %cst = arith.constant dense<0.000000e+00> : vector<64x128xf32>
    %3 = tpu.matmul %0, %2, %cst {dimension_numbers = #tpu.dot_dimension_numbers<[1], [0], [0], [1], [0, 0, 1, 1], [], []>} : vector<64x16xbf16>, vector<16x128xbf16>, vector<64x128xf32> -> vector<64x128xf32>
    %4 = vector.extract_strided_slice %3 {offsets = [0, 0], sizes = [4, 128], strides = [1, 1]} : vector<64x128xf32> to vector<4x128xf32>
    %c0_4 = arith.constant 0 : index
    %c0_5 = arith.constant 0 : index
    %c0_6 = arith.constant 0 : index
    %5 = vector.load %arg5[%c0_4, %c0_5, %c0_6] : memref<1x96x128xf32, #tpu.memory_space<vmem>>, vector<1x4x128xf32>
    %6 = vector.shape_cast %5 : vector<1x4x128xf32> to vector<4x128xf32>
    %7 = vector.shape_cast %4 : vector<4x128xf32> to vector<1x4x128xf32>
    tpu.vector_store %arg5[%c0_4, %c0_5, %c0_6], %7 {strides = array<i32>} : memref<1x96x128xf32, #tpu.memory_space<vmem>>, vector<1x4x128xf32>,
    %c0_7 = arith.constant 0 : index
    %c0_8 = arith.constant 0 : index
    %c0_9 = arith.constant 0 : index
    %8 = vector.load %arg4[%c0_7, %c0_8, %c0_9] : memref<1x32x128xf32, #tpu.memory_space<vmem>>, vector<1x2x128xf32>
    %9 = vector.shape_cast %8 : vector<1x2x128xf32> to vector<2x128xf32>
    %c0_10 = arith.constant 0 : index
    %c4 = arith.constant 4 : index
    %c0_11 = arith.constant 0 : index
    %10 = vector.load %arg5[%c0_10, %c4, %c0_11] : memref<1x96x128xf32, #tpu.memory_space<vmem>>, vector<1x2x128xf32>
    %11 = vector.shape_cast %10 : vector<1x2x128xf32> to vector<2x128xf32>
    %12 = vector.shape_cast %9 : vector<2x128xf32> to vector<1x2x128xf32>
    tpu.vector_store %arg5[%c0_10, %c4, %c0_11], %12 {strides = array<i32>} : memref<1x96x128xf32, #tpu.memory_space<vmem>>, vector<1x2x128xf32>,
    %13 = vector.extract_strided_slice %3 {offsets = [4, 0], sizes = [4, 128], strides = [1, 1]} : vector<64x128xf32> to vector<4x128xf32>
    %c0_12 = arith.constant 0 : index
    %c6 = arith.constant 6 : index
    %c0_13 = arith.constant 0 : index
    %14 = vector.load %arg5[%c0_12, %c6, %c0_13] : memref<1x96x128xf32, #tpu.memory_space<vmem>>, vector<1x4x128xf32>
    %15 = vector.shape_cast %14 : vector<1x4x128xf32> to vector<4x128xf32>
    %16 = vector.shape_cast %13 : vector<4x128xf32> to vector<1x4x128xf32>
    tpu.vector_store %arg5[%c0_12, %c6, %c0_13], %16 {strides = array<i32>} : memref<1x96x128xf32, #tpu.memory_space<vmem>>, vector<1x4x128xf32>,
    %c0_14 = arith.constant 0 : index
    %c2 = arith.constant 2 : index
    %c0_15 = arith.constant 0 : index
    %17 = vector.load %arg4[%c0_14, %c2, %c0_15] : memref<1x32x128xf32, #tpu.memory_space<vmem>>, vector<1x2x128xf32>
    %18 = vector.shape_cast %17 : vector<1x2x128xf32> to vector<2x128xf32>
    %c0_16 = arith.constant 0 : index
    %c10 = arith.constant 10 : index
    %c0_17 = arith.constant 0 : index
    %19 = vector.load %arg5[%c0_16, %c10, %c0_17] : memref<1x96x128xf32, #tpu.memory_space<vmem>>, vector<1x2x128xf32>
    %20 = vector.shape_cast %19 : vector<1x2x128xf32> to vector<2x128xf32>
    %21 = vector.shape_cast %18 : vector<2x128xf32> to vector<1x2x128xf32>
    tpu.vector_store %arg5[%c0_16, %c10, %c0_17], %21 {strides = array<i32>} : memref<1x96x128xf32, #tpu.memory_space<vmem>>, vector<1x2x128xf32>,
    %22 = vector.extract_strided_slice %3 {offsets = [8, 0], sizes = [4, 128], strides = [1, 1]} : vector<64x128xf32> to vector<4x128xf32>
    %c0_18 = arith.constant 0 : index
    %c12 = arith.constant 12 : index
    %c0_19 = arith.constant 0 : index
    %23 = vector.load %arg5[%c0_18, %c12, %c0_19] : memref<1x96x128xf32, #tpu.memory_space<vmem>>, vector<1x4x128xf32>
    %24 = vector.shape_cast %23 : vector<1x4x128xf32> to vector<4x128xf32>
    %25 = vector.shape_cast %22 : vector<4x128xf32> to vector<1x4x128xf32>
    tpu.vector_store %arg5[%c0_18, %c12, %c0_19], %25 {strides = array<i32>} : memref<1x96x128xf32, #tpu.memory_space<vmem>>, vector<1x4x128xf32>,
    %c0_20 = arith.constant 0 : index
    %c4_21 = arith.constant 4 : index
    %c0_22 = arith.constant 0 : index
    %26 = vector.load %arg4[%c0_20, %c4_21, %c0_22] : memref<1x32x128xf32, #tpu.memory_space<vmem>>, vector<1x2x128xf32>
    %27 = vector.shape_cast %26 : vector<1x2x128xf32> to vector<2x128xf32>
    %c0_23 = arith.constant 0 : index
    %c16 = arith.constant 16 : index
    %c0_24 = arith.constant 0 : index
    %28 = vector.load %arg5[%c0_23, %c16, %c0_24] : memref<1x96x128xf32, #tpu.memory_space<vmem>>, vector<1x2x128xf32>
    %29 = vector.shape_cast %28 : vector<1x2x128xf32> to vector<2x128xf32>
    %30 = vector.shape_cast %27 : vector<2x128xf32> to vector<1x2x128xf32>
    tpu.vector_store %arg5[%c0_23, %c16, %c0_24], %30 {strides = array<i32>} : memref<1x96x128xf32, #tpu.memory_space<vmem>>, vector<1x2x128xf32>,
    %31 = vector.extract_strided_slice %3 {offsets = [12, 0], sizes = [4, 128], strides = [1, 1]} : vector<64x128xf32> to vector<4x128xf32>
    %c0_25 = arith.constant 0 : index
    %c18 = arith.constant 18 : index
    %c0_26 = arith.constant 0 : index
    %32 = vector.load %arg5[%c0_25, %c18, %c0_26] : memref<1x96x128xf32, #tpu.memory_space<vmem>>, vector<1x4x128xf32>
    %33 = vector.shape_cast %32 : vector<1x4x128xf32> to vector<4x128xf32>
    %34 = vector.shape_cast %31 : vector<4x128xf32> to vector<1x4x128xf32>
    tpu.vector_store %arg5[%c0_25, %c18, %c0_26], %34 {strides = array<i32>} : memref<1x96x128xf32, #tpu.memory_space<vmem>>, vector<1x4x128xf32>,
    %c0_27 = arith.constant 0 : index
    %c6_28 = arith.constant 6 : index
    %c0_29 = arith.constant 0 : index
    %35 = vector.load %arg4[%c0_27, %c6_28, %c0_29] : memref<1x32x128xf32, #tpu.memory_space<vmem>>, vector<1x2x128xf32>
    %36 = vector.shape_cast %35 : vector<1x2x128xf32> to vector<2x128xf32>
    %c0_30 = arith.constant 0 : index
    %c22 = arith.constant 22 : index
    %c0_31 = arith.constant 0 : index
    %37 = vector.load %arg5[%c0_30, %c22, %c0_31] : memref<1x96x128xf32, #tpu.memory_space<vmem>>, vector<1x2x128xf32>
    %38 = vector.shape_cast %37 : vector<1x2x128xf32> to vector<2x128xf32>
    %39 = vector.shape_cast %36 : vector<2x128xf32> to vector<1x2x128xf32>
    tpu.vector_store %arg5[%c0_30, %c22, %c0_31], %39 {strides = array<i32>} : memref<1x96x128xf32, #tpu.memory_space<vmem>>, vector<1x2x128xf32>,
    %40 = vector.extract_strided_slice %3 {offsets = [16, 0], sizes = [4, 128], strides = [1, 1]} : vector<64x128xf32> to vector<4x128xf32>
    %c0_32 = arith.constant 0 : index
    %c24 = arith.constant 24 : index
    %c0_33 = arith.constant 0 : index
    %41 = vector.load %arg5[%c0_32, %c24, %c0_33] : memref<1x96x128xf32, #tpu.memory_space<vmem>>, vector<1x4x128xf32>
    %42 = vector.shape_cast %41 : vector<1x4x128xf32> to vector<4x128xf32>
    %43 = vector.shape_cast %40 : vector<4x128xf32> to vector<1x4x128xf32>
    tpu.vector_store %arg5[%c0_32, %c24, %c0_33], %43 {strides = array<i32>} : memref<1x96x128xf32, #tpu.memory_space<vmem>>, vector<1x4x128xf32>,
    %c0_34 = arith.constant 0 : index
    %c8 = arith.constant 8 : index
    %c0_35 = arith.constant 0 : index
    %44 = vector.load %arg4[%c0_34, %c8, %c0_35] : memref<1x32x128xf32, #tpu.memory_space<vmem>>, vector<1x2x128xf32>
    %45 = vector.shape_cast %44 : vector<1x2x128xf32> to vector<2x128xf32>
    %c0_36 = arith.constant 0 : index
    %c28 = arith.constant 28 : index
    %c0_37 = arith.constant 0 : index
    %46 = vector.load %arg5[%c0_36, %c28, %c0_37] : memref<1x96x128xf32, #tpu.memory_space<vmem>>, vector<1x2x128xf32>
    %47 = vector.shape_cast %46 : vector<1x2x128xf32> to vector<2x128xf32>
    %48 = vector.shape_cast %45 : vector<2x128xf32> to vector<1x2x128xf32>
    tpu.vector_store %arg5[%c0_36, %c28, %c0_37], %48 {strides = array<i32>} : memref<1x96x128xf32, #tpu.memory_space<vmem>>, vector<1x2x128xf32>,
    %49 = vector.extract_strided_slice %3 {offsets = [20, 0], sizes = [4, 128], strides = [1, 1]} : vector<64x128xf32> to vector<4x128xf32>
    %c0_38 = arith.constant 0 : index
    %c30 = arith.constant 30 : index
    %c0_39 = arith.constant 0 : index
    %50 = vector.load %arg5[%c0_38, %c30, %c0_39] : memref<1x96x128xf32, #tpu.memory_space<vmem>>, vector<1x4x128xf32>
    %51 = vector.shape_cast %50 : vector<1x4x128xf32> to vector<4x128xf32>
    %52 = vector.shape_cast %49 : vector<4x128xf32> to vector<1x4x128xf32>
    tpu.vector_store %arg5[%c0_38, %c30, %c0_39], %52 {strides = array<i32>} : memref<1x96x128xf32, #tpu.memory_space<vmem>>, vector<1x4x128xf32>,
    %c0_40 = arith.constant 0 : index
    %c10_41 = arith.constant 10 : index
    %c0_42 = arith.constant 0 : index
    %53 = vector.load %arg4[%c0_40, %c10_41, %c0_42] : memref<1x32x128xf32, #tpu.memory_space<vmem>>, vector<1x2x128xf32>
    %54 = vector.shape_cast %53 : vector<1x2x128xf32> to vector<2x128xf32>
    %c0_43 = arith.constant 0 : index
    %c34 = arith.constant 34 : index
    %c0_44 = arith.constant 0 : index
    %55 = vector.load %arg5[%c0_43, %c34, %c0_44] : memref<1x96x128xf32, #tpu.memory_space<vmem>>, vector<1x2x128xf32>
    %56 = vector.shape_cast %55 : vector<1x2x128xf32> to vector<2x128xf32>
    %57 = vector.shape_cast %54 : vector<2x128xf32> to vector<1x2x128xf32>
    tpu.vector_store %arg5[%c0_43, %c34, %c0_44], %57 {strides = array<i32>} : memref<1x96x128xf32, #tpu.memory_space<vmem>>, vector<1x2x128xf32>,
    %58 = vector.extract_strided_slice %3 {offsets = [24, 0], sizes = [4, 128], strides = [1, 1]} : vector<64x128xf32> to vector<4x128xf32>
    %c0_45 = arith.constant 0 : index
    %c36 = arith.constant 36 : index
    %c0_46 = arith.constant 0 : index
    %59 = vector.load %arg5[%c0_45, %c36, %c0_46] : memref<1x96x128xf32, #tpu.memory_space<vmem>>, vector<1x4x128xf32>
    %60 = vector.shape_cast %59 : vector<1x4x128xf32> to vector<4x128xf32>
    %61 = vector.shape_cast %58 : vector<4x128xf32> to vector<1x4x128xf32>
    tpu.vector_store %arg5[%c0_45, %c36, %c0_46], %61 {strides = array<i32>} : memref<1x96x128xf32, #tpu.memory_space<vmem>>, vector<1x4x128xf32>,
    %c0_47 = arith.constant 0 : index
    %c12_48 = arith.constant 12 : index
    %c0_49 = arith.constant 0 : index
    %62 = vector.load %arg4[%c0_47, %c12_48, %c0_49] : memref<1x32x128xf32, #tpu.memory_space<vmem>>, vector<1x2x128xf32>
    %63 = vector.shape_cast %62 : vector<1x2x128xf32> to vector<2x128xf32>
    %c0_50 = arith.constant 0 : index
    %c40 = arith.constant 40 : index
    %c0_51 = arith.constant 0 : index
    %64 = vector.load %arg5[%c0_50, %c40, %c0_51] : memref<1x96x128xf32, #tpu.memory_space<vmem>>, vector<1x2x128xf32>
    %65 = vector.shape_cast %64 : vector<1x2x128xf32> to vector<2x128xf32>
    %66 = vector.shape_cast %63 : vector<2x128xf32> to vector<1x2x128xf32>
    tpu.vector_store %arg5[%c0_50, %c40, %c0_51], %66 {strides = array<i32>} : memref<1x96x128xf32, #tpu.memory_space<vmem>>, vector<1x2x128xf32>,
    %67 = vector.extract_strided_slice %3 {offsets = [28, 0], sizes = [4, 128], strides = [1, 1]} : vector<64x128xf32> to vector<4x128xf32>
    %c0_52 = arith.constant 0 : index
    %c42 = arith.constant 42 : index
    %c0_53 = arith.constant 0 : index
    %68 = vector.load %arg5[%c0_52, %c42, %c0_53] : memref<1x96x128xf32, #tpu.memory_space<vmem>>, vector<1x4x128xf32>
    %69 = vector.shape_cast %68 : vector<1x4x128xf32> to vector<4x128xf32>
    %70 = vector.shape_cast %67 : vector<4x128xf32> to vector<1x4x128xf32>
    tpu.vector_store %arg5[%c0_52, %c42, %c0_53], %70 {strides = array<i32>} : memref<1x96x128xf32, #tpu.memory_space<vmem>>, vector<1x4x128xf32>,
    %c0_54 = arith.constant 0 : index
    %c14 = arith.constant 14 : index
    %c0_55 = arith.constant 0 : index
    %71 = vector.load %arg4[%c0_54, %c14, %c0_55] : memref<1x32x128xf32, #tpu.memory_space<vmem>>, vector<1x2x128xf32>
    %72 = vector.shape_cast %71 : vector<1x2x128xf32> to vector<2x128xf32>
    %c0_56 = arith.constant 0 : index
    %c46 = arith.constant 46 : index
    %c0_57 = arith.constant 0 : index
    %73 = vector.load %arg5[%c0_56, %c46, %c0_57] : memref<1x96x128xf32, #tpu.memory_space<vmem>>, vector<1x2x128xf32>
    %74 = vector.shape_cast %73 : vector<1x2x128xf32> to vector<2x128xf32>
    %75 = vector.shape_cast %72 : vector<2x128xf32> to vector<1x2x128xf32>
    tpu.vector_store %arg5[%c0_56, %c46, %c0_57], %75 {strides = array<i32>} : memref<1x96x128xf32, #tpu.memory_space<vmem>>, vector<1x2x128xf32>,
    %76 = vector.extract_strided_slice %3 {offsets = [32, 0], sizes = [4, 128], strides = [1, 1]} : vector<64x128xf32> to vector<4x128xf32>
    %c0_58 = arith.constant 0 : index
    %c48 = arith.constant 48 : index
    %c0_59 = arith.constant 0 : index
    %77 = vector.load %arg5[%c0_58, %c48, %c0_59] : memref<1x96x128xf32, #tpu.memory_space<vmem>>, vector<1x4x128xf32>
    %78 = vector.shape_cast %77 : vector<1x4x128xf32> to vector<4x128xf32>
    %79 = vector.shape_cast %76 : vector<4x128xf32> to vector<1x4x128xf32>
    tpu.vector_store %arg5[%c0_58, %c48, %c0_59], %79 {strides = array<i32>} : memref<1x96x128xf32, #tpu.memory_space<vmem>>, vector<1x4x128xf32>,
    %c0_60 = arith.constant 0 : index
    %c16_61 = arith.constant 16 : index
    %c0_62 = arith.constant 0 : index
    %80 = vector.load %arg4[%c0_60, %c16_61, %c0_62] : memref<1x32x128xf32, #tpu.memory_space<vmem>>, vector<1x2x128xf32>
    %81 = vector.shape_cast %80 : vector<1x2x128xf32> to vector<2x128xf32>
    %c0_63 = arith.constant 0 : index
    %c52 = arith.constant 52 : index
    %c0_64 = arith.constant 0 : index
    %82 = vector.load %arg5[%c0_63, %c52, %c0_64] : memref<1x96x128xf32, #tpu.memory_space<vmem>>, vector<1x2x128xf32>
    %83 = vector.shape_cast %82 : vector<1x2x128xf32> to vector<2x128xf32>
    %84 = vector.shape_cast %81 : vector<2x128xf32> to vector<1x2x128xf32>
    tpu.vector_store %arg5[%c0_63, %c52, %c0_64], %84 {strides = array<i32>} : memref<1x96x128xf32, #tpu.memory_space<vmem>>, vector<1x2x128xf32>,
    %85 = vector.extract_strided_slice %3 {offsets = [36, 0], sizes = [4, 128], strides = [1, 1]} : vector<64x128xf32> to vector<4x128xf32>
    %c0_65 = arith.constant 0 : index
    %c54 = arith.constant 54 : index
    %c0_66 = arith.constant 0 : index
    %86 = vector.load %arg5[%c0_65, %c54, %c0_66] : memref<1x96x128xf32, #tpu.memory_space<vmem>>, vector<1x4x128xf32>
    %87 = vector.shape_cast %86 : vector<1x4x128xf32> to vector<4x128xf32>
    %88 = vector.shape_cast %85 : vector<4x128xf32> to vector<1x4x128xf32>
    tpu.vector_store %arg5[%c0_65, %c54, %c0_66], %88 {strides = array<i32>} : memref<1x96x128xf32, #tpu.memory_space<vmem>>, vector<1x4x128xf32>,
    %c0_67 = arith.constant 0 : index
    %c18_68 = arith.constant 18 : index
    %c0_69 = arith.constant 0 : index
    %89 = vector.load %arg4[%c0_67, %c18_68, %c0_69] : memref<1x32x128xf32, #tpu.memory_space<vmem>>, vector<1x2x128xf32>
    %90 = vector.shape_cast %89 : vector<1x2x128xf32> to vector<2x128xf32>
    %c0_70 = arith.constant 0 : index
    %c58 = arith.constant 58 : index
    %c0_71 = arith.constant 0 : index
    %91 = vector.load %arg5[%c0_70, %c58, %c0_71] : memref<1x96x128xf32, #tpu.memory_space<vmem>>, vector<1x2x128xf32>
    %92 = vector.shape_cast %91 : vector<1x2x128xf32> to vector<2x128xf32>
    %93 = vector.shape_cast %90 : vector<2x128xf32> to vector<1x2x128xf32>
    tpu.vector_store %arg5[%c0_70, %c58, %c0_71], %93 {strides = array<i32>} : memref<1x96x128xf32, #tpu.memory_space<vmem>>, vector<1x2x128xf32>,
    %94 = vector.extract_strided_slice %3 {offsets = [40, 0], sizes = [4, 128], strides = [1, 1]} : vector<64x128xf32> to vector<4x128xf32>
    %c0_72 = arith.constant 0 : index
    %c60 = arith.constant 60 : index
    %c0_73 = arith.constant 0 : index
    %95 = vector.load %arg5[%c0_72, %c60, %c0_73] : memref<1x96x128xf32, #tpu.memory_space<vmem>>, vector<1x4x128xf32>
    %96 = vector.shape_cast %95 : vector<1x4x128xf32> to vector<4x128xf32>
    %97 = vector.shape_cast %94 : vector<4x128xf32> to vector<1x4x128xf32>
    tpu.vector_store %arg5[%c0_72, %c60, %c0_73], %97 {strides = array<i32>} : memref<1x96x128xf32, #tpu.memory_space<vmem>>, vector<1x4x128xf32>,
    %c0_74 = arith.constant 0 : index
    %c20 = arith.constant 20 : index
    %c0_75 = arith.constant 0 : index
    %98 = vector.load %arg4[%c0_74, %c20, %c0_75] : memref<1x32x128xf32, #tpu.memory_space<vmem>>, vector<1x2x128xf32>
    %99 = vector.shape_cast %98 : vector<1x2x128xf32> to vector<2x128xf32>
    %c0_76 = arith.constant 0 : index
    %c64 = arith.constant 64 : index
    %c0_77 = arith.constant 0 : index
    %100 = vector.load %arg5[%c0_76, %c64, %c0_77] : memref<1x96x128xf32, #tpu.memory_space<vmem>>, vector<1x2x128xf32>
    %101 = vector.shape_cast %100 : vector<1x2x128xf32> to vector<2x128xf32>
    %102 = vector.shape_cast %99 : vector<2x128xf32> to vector<1x2x128xf32>
    tpu.vector_store %arg5[%c0_76, %c64, %c0_77], %102 {strides = array<i32>} : memref<1x96x128xf32, #tpu.memory_space<vmem>>, vector<1x2x128xf32>,
    %103 = vector.extract_strided_slice %3 {offsets = [44, 0], sizes = [4, 128], strides = [1, 1]} : vector<64x128xf32> to vector<4x128xf32>
    %c0_78 = arith.constant 0 : index
    %c66 = arith.constant 66 : index
    %c0_79 = arith.constant 0 : index
    %104 = vector.load %arg5[%c0_78, %c66, %c0_79] : memref<1x96x128xf32, #tpu.memory_space<vmem>>, vector<1x4x128xf32>
    %105 = vector.shape_cast %104 : vector<1x4x128xf32> to vector<4x128xf32>
    %106 = vector.shape_cast %103 : vector<4x128xf32> to vector<1x4x128xf32>
    tpu.vector_store %arg5[%c0_78, %c66, %c0_79], %106 {strides = array<i32>} : memref<1x96x128xf32, #tpu.memory_space<vmem>>, vector<1x4x128xf32>,
    %c0_80 = arith.constant 0 : index
    %c22_81 = arith.constant 22 : index
    %c0_82 = arith.constant 0 : index
    %107 = vector.load %arg4[%c0_80, %c22_81, %c0_82] : memref<1x32x128xf32, #tpu.memory_space<vmem>>, vector<1x2x128xf32>
    %108 = vector.shape_cast %107 : vector<1x2x128xf32> to vector<2x128xf32>
    %c0_83 = arith.constant 0 : index
    %c70 = arith.constant 70 : index
    %c0_84 = arith.constant 0 : index
    %109 = vector.load %arg5[%c0_83, %c70, %c0_84] : memref<1x96x128xf32, #tpu.memory_space<vmem>>, vector<1x2x128xf32>
    %110 = vector.shape_cast %109 : vector<1x2x128xf32> to vector<2x128xf32>
    %111 = vector.shape_cast %108 : vector<2x128xf32> to vector<1x2x128xf32>
    tpu.vector_store %arg5[%c0_83, %c70, %c0_84], %111 {strides = array<i32>} : memref<1x96x128xf32, #tpu.memory_space<vmem>>, vector<1x2x128xf32>,
    %112 = vector.extract_strided_slice %3 {offsets = [48, 0], sizes = [4, 128], strides = [1, 1]} : vector<64x128xf32> to vector<4x128xf32>
    %c0_85 = arith.constant 0 : index
    %c72 = arith.constant 72 : index
    %c0_86 = arith.constant 0 : index
    %113 = vector.load %arg5[%c0_85, %c72, %c0_86] : memref<1x96x128xf32, #tpu.memory_space<vmem>>, vector<1x4x128xf32>
    %114 = vector.shape_cast %113 : vector<1x4x128xf32> to vector<4x128xf32>
    %115 = vector.shape_cast %112 : vector<4x128xf32> to vector<1x4x128xf32>
    tpu.vector_store %arg5[%c0_85, %c72, %c0_86], %115 {strides = array<i32>} : memref<1x96x128xf32, #tpu.memory_space<vmem>>, vector<1x4x128xf32>,
    %c0_87 = arith.constant 0 : index
    %c24_88 = arith.constant 24 : index
    %c0_89 = arith.constant 0 : index
    %116 = vector.load %arg4[%c0_87, %c24_88, %c0_89] : memref<1x32x128xf32, #tpu.memory_space<vmem>>, vector<1x2x128xf32>
    %117 = vector.shape_cast %116 : vector<1x2x128xf32> to vector<2x128xf32>
    %c0_90 = arith.constant 0 : index
    %c76 = arith.constant 76 : index
    %c0_91 = arith.constant 0 : index
    %118 = vector.load %arg5[%c0_90, %c76, %c0_91] : memref<1x96x128xf32, #tpu.memory_space<vmem>>, vector<1x2x128xf32>
    %119 = vector.shape_cast %118 : vector<1x2x128xf32> to vector<2x128xf32>
    %120 = vector.shape_cast %117 : vector<2x128xf32> to vector<1x2x128xf32>
    tpu.vector_store %arg5[%c0_90, %c76, %c0_91], %120 {strides = array<i32>} : memref<1x96x128xf32, #tpu.memory_space<vmem>>, vector<1x2x128xf32>,
    %121 = vector.extract_strided_slice %3 {offsets = [52, 0], sizes = [4, 128], strides = [1, 1]} : vector<64x128xf32> to vector<4x128xf32>
    %c0_92 = arith.constant 0 : index
    %c78 = arith.constant 78 : index
    %c0_93 = arith.constant 0 : index
    %122 = vector.load %arg5[%c0_92, %c78, %c0_93] : memref<1x96x128xf32, #tpu.memory_space<vmem>>, vector<1x4x128xf32>
    %123 = vector.shape_cast %122 : vector<1x4x128xf32> to vector<4x128xf32>
    %124 = vector.shape_cast %121 : vector<4x128xf32> to vector<1x4x128xf32>
    tpu.vector_store %arg5[%c0_92, %c78, %c0_93], %124 {strides = array<i32>} : memref<1x96x128xf32, #tpu.memory_space<vmem>>, vector<1x4x128xf32>,
    %c0_94 = arith.constant 0 : index
    %c26 = arith.constant 26 : index
    %c0_95 = arith.constant 0 : index
    %125 = vector.load %arg4[%c0_94, %c26, %c0_95] : memref<1x32x128xf32, #tpu.memory_space<vmem>>, vector<1x2x128xf32>
    %126 = vector.shape_cast %125 : vector<1x2x128xf32> to vector<2x128xf32>
    %c0_96 = arith.constant 0 : index
    %c82 = arith.constant 82 : index
    %c0_97 = arith.constant 0 : index
    %127 = vector.load %arg5[%c0_96, %c82, %c0_97] : memref<1x96x128xf32, #tpu.memory_space<vmem>>, vector<1x2x128xf32>
    %128 = vector.shape_cast %127 : vector<1x2x128xf32> to vector<2x128xf32>
    %129 = vector.shape_cast %126 : vector<2x128xf32> to vector<1x2x128xf32>
    tpu.vector_store %arg5[%c0_96, %c82, %c0_97], %129 {strides = array<i32>} : memref<1x96x128xf32, #tpu.memory_space<vmem>>, vector<1x2x128xf32>,
    %130 = vector.extract_strided_slice %3 {offsets = [56, 0], sizes = [4, 128], strides = [1, 1]} : vector<64x128xf32> to vector<4x128xf32>
    %c0_98 = arith.constant 0 : index
    %c84 = arith.constant 84 : index
    %c0_99 = arith.constant 0 : index
    %131 = vector.load %arg5[%c0_98, %c84, %c0_99] : memref<1x96x128xf32, #tpu.memory_space<vmem>>, vector<1x4x128xf32>
    %132 = vector.shape_cast %131 : vector<1x4x128xf32> to vector<4x128xf32>
    %133 = vector.shape_cast %130 : vector<4x128xf32> to vector<1x4x128xf32>
    tpu.vector_store %arg5[%c0_98, %c84, %c0_99], %133 {strides = array<i32>} : memref<1x96x128xf32, #tpu.memory_space<vmem>>, vector<1x4x128xf32>,
    %c0_100 = arith.constant 0 : index
    %c28_101 = arith.constant 28 : index
    %c0_102 = arith.constant 0 : index
    %134 = vector.load %arg4[%c0_100, %c28_101, %c0_102] : memref<1x32x128xf32, #tpu.memory_space<vmem>>, vector<1x2x128xf32>
    %135 = vector.shape_cast %134 : vector<1x2x128xf32> to vector<2x128xf32>
    %c0_103 = arith.constant 0 : index
    %c88 = arith.constant 88 : index
    %c0_104 = arith.constant 0 : index
    %136 = vector.load %arg5[%c0_103, %c88, %c0_104] : memref<1x96x128xf32, #tpu.memory_space<vmem>>, vector<1x2x128xf32>
    %137 = vector.shape_cast %136 : vector<1x2x128xf32> to vector<2x128xf32>
    %138 = vector.shape_cast %135 : vector<2x128xf32> to vector<1x2x128xf32>
    tpu.vector_store %arg5[%c0_103, %c88, %c0_104], %138 {strides = array<i32>} : memref<1x96x128xf32, #tpu.memory_space<vmem>>, vector<1x2x128xf32>,
    %139 = vector.extract_strided_slice %3 {offsets = [60, 0], sizes = [4, 128], strides = [1, 1]} : vector<64x128xf32> to vector<4x128xf32>
    %c0_105 = arith.constant 0 : index
    %c90 = arith.constant 90 : index
    %c0_106 = arith.constant 0 : index
    %140 = vector.load %arg5[%c0_105, %c90, %c0_106] : memref<1x96x128xf32, #tpu.memory_space<vmem>>, vector<1x4x128xf32>
    %141 = vector.shape_cast %140 : vector<1x4x128xf32> to vector<4x128xf32>
    %142 = vector.shape_cast %139 : vector<4x128xf32> to vector<1x4x128xf32>
    tpu.vector_store %arg5[%c0_105, %c90, %c0_106], %142 {strides = array<i32>} : memref<1x96x128xf32, #tpu.memory_space<vmem>>, vector<1x4x128xf32>,
    %c0_107 = arith.constant 0 : index
    %c30_108 = arith.constant 30 : index
    %c0_109 = arith.constant 0 : index
    %143 = vector.load %arg4[%c0_107, %c30_108, %c0_109] : memref<1x32x128xf32, #tpu.memory_space<vmem>>, vector<1x2x128xf32>
    %144 = vector.shape_cast %143 : vector<1x2x128xf32> to vector<2x128xf32>
    %c0_110 = arith.constant 0 : index
    %c94 = arith.constant 94 : index
    %c0_111 = arith.constant 0 : index
    %145 = vector.load %arg5[%c0_110, %c94, %c0_111] : memref<1x96x128xf32, #tpu.memory_space<vmem>>, vector<1x2x128xf32>
    %146 = vector.shape_cast %145 : vector<1x2x128xf32> to vector<2x128xf32>
    %147 = vector.shape_cast %144 : vector<2x128xf32> to vector<1x2x128xf32>
    tpu.vector_store %arg5[%c0_110, %c94, %c0_111], %147 {strides = array<i32>} : memref<1x96x128xf32, #tpu.memory_space<vmem>>, vector<1x2x128xf32>,
    return
  }
  func.func @transform_0(%arg0: i32, %arg1: i32) -> (i32, i32, i32) {
    %c0_i32 = arith.constant 0 : i32
    %c0_i32_0 = arith.constant 0 : i32
    return %arg0, %c0_i32, %arg1 : i32, i32, i32
  }
  func.func @transform_1(%arg0: i32, %arg1: i32) -> (i32, i32) {
    %c0_i32 = arith.constant 0 : i32
    %c0_i32_0 = arith.constant 0 : i32
    %c0_i32_1 = arith.constant 0 : i32
    return %c0_i32, %c0_i32_0 : i32, i32
  }
  func.func @transform_2(%arg0: i32, %arg1: i32) -> (i32, i32, i32) {
    %c0_i32 = arith.constant 0 : i32
    %c0_i32_0 = arith.constant 0 : i32
    return %arg0, %c0_i32, %arg1 : i32, i32, i32
  }
  func.func @transform_3(%arg0: i32, %arg1: i32) -> (i32, i32, i32) {
    %c0_i32 = arith.constant 0 : i32
    %c0_i32_0 = arith.constant 0 : i32
    return %arg0, %c0_i32, %arg1 : i32, i32, i32
  }
}

</mosaic_0001>

<bundles_post_ra>
// kernel: projection_shortcut_forward.1
= control target key start
LH: loop header
LB: loop body
LE: loop exit
PB: predicated region body
PF: predicated region fallthrough
CT: control target
= control target key end

     0   :  { %s611_s12 = smov 0   ;;  %s613_s13 = smov 0   ;;  %s715_s0 = inlined_call_operand.vmem [shape: bf16[2,16,128], index: 0, kind: input, shape index: {}]   ;;  %s716_s1 = inlined_call_operand.vmem [shape: bf16[64,16], index: 1, kind: input, shape index: {}]   ;;  %s717_s2 = inlined_call_operand.vmem [shape: f32[2,32,128], index: 2, kind: input, shape index: {}]   ;;  %s718_s3 = inlined_call_operand.vmem [shape: f32[2,96,128], index: 3, kind: output, shape index: {}]  }
   0x1   :  { %s615_s14 = smov 0  }
   0x2 LB: > { %s25_s15 = sadd.s32 1, %s585_s13  ;;  %p501_p0 = scmp.ge.s32.totalorder %s589_s14, 1  ;;  %s589_s14 = sphi %s615_s14, %s13_s14   ;;  %s585_s13 = sphi %s613_s13, %s720_s13   ;;  %s581_s12 = sphi %s611_s12, %s719_s12  }
   0x3   : > { %p27_p1 = scmp.ge.s32.totalorder %s25_s15, 2  ;;  %p171_p2 = scmp.lt.s32.totalorder %s589_s14, 3 }
   0x5   : > { %s722_s15 = smov (%p27_p1, %s25_s15), 0  ;;  %p172_p3 = pnand %p501_p0, %p171_p2 }
   0x6   : > { %p209_p4 = scmp.lt.s32.totalorder (!%p172_p3), %s581_s12, 1 }
   0x7   : > { %175 = sbr.rel (%p172_p3) target bundleno = 221 (0xdd), region = 32 }
   0xc   : > { %v563_v0 = vld [vmem:[%s716_s1] sm:$0xff]   ;;  %vm270_vm0 = vcmask 130048   ;;  %v564_v1 = vld [vmem:[%s716_s1 + $0x10] sm:$0xff]   ;;  %s724_s12 = smov (!%p209_p4, %s581_s12), 1  ;;  %v565_v3 = vld [vmem:[%s716_s1 + $0x8] sm:$0xff]  }
   0xd   : > { %527 = vmatprep.mubr.msk.bf16.mxu0 %vm270_vm0, %v563_v0  ;;  %531 = vmatprep.mubr.msk.bf16.mxu1 %vm270_vm0, %v564_v1  ;;  %s518_s20 = sshll.u32 %s724_s12, 3  ;;  %s519_s21 = sshll.u32 %s724_s12, 5  ;;  %v566_v4 = vld [vmem:[%s716_s1 + $0x18] sm:$0xff]  }
   0xe   : > { %s216_s24 = scalar_lea.vmem %s715_s0, %s518_s20  ;;  %s643_s27 = scalar_lea.vmem %s717_s2, %s519_s21 }
   0xf   : > { %s537_s28 = smul.u32 96, %s724_s12  ;;  %v562_v2 = vld [vmem:[%s216_s24] sm:$0xff]   ;;  %v361_v9 = vld [vmem:[%s643_s27 + $0x8] sm:$0x3]  ;;  %v364_v10 = vld [vmem:[%s643_s27 + $0xa] sm:$0x3] }
  0x10   : > { %v349_v5 = vld [vmem:[%s643_s27] sm:$0x3]  ;;  %v352_v6 = vld [vmem:[%s643_s27 + $0x2] sm:$0x3]  ;;  %v355_v7 = vld [vmem:[%s643_s27 + $0x4] sm:$0x3]  ;;  %525 = vmatprep.subr.bf16.mxu0 %v562_v2  ;;  %535 = vmatprep.subr.bf16.mxu1 %v562_v2 }
  0x11   : > { %s657_s8 = scalar_lea.vmem %s718_s3, %s537_s28  ;;  %v358_v8 = vld [vmem:[%s643_s27 + $0x6] sm:$0x3]  ;;  %v367_v11 = vld [vmem:[%s643_s27 + $0xc] sm:$0x3]  ;;  %v370_v12 = vld [vmem:[%s643_s27 + $0xe] sm:$0x3]  ;;  %526 = vmatpush3.bf16.msra.mxu0 %v562_v2  ;;  %536 = vmatpush3.bf16.msra.mxu1 %v562_v2 }
  0x12   : > { %350 = vst [vmem:[%s657_s8 + $0x4] sm:$0x3] %v349_v5  ;;  %353 = vst [vmem:[%s657_s8 + $0xa] sm:$0x3] %v352_v6  ;;  %v373_v13 = vld [vmem:[%s643_s27 + $0x10] sm:$0x3] }
  0x13   : > { %356 = vst [vmem:[%s657_s8 + $0x10] sm:$0x3] %v355_v7  ;;  %359 = vst [vmem:[%s657_s8 + $0x16] sm:$0x3] %v358_v8  ;;  %v376_v14 = vld [vmem:[%s643_s27 + $0x12] sm:$0x3] }
  0x14   : > { %362 = vst [vmem:[%s657_s8 + $0x1c] sm:$0x3] %v361_v9  ;;  %365 = vst [vmem:[%s657_s8 + $0x22] sm:$0x3] %v364_v10  ;;  %v379_v15 = vld [vmem:[%s643_s27 + $0x14] sm:$0x3]  ;;  %528 = vmatmul.mubr.msk.bf16.vlgmr.msra.gmra.mxu0 %vm270_vm0, %v565_v3  ;;  %532 = vmatmul.mubr.msk.bf16.vlgmr.msra.gmra.mxu1 %vm270_vm0, %v566_v4 }
  0x15   : > { %368 = vst [vmem:[%s657_s8 + $0x28] sm:$0x3] %v367_v11  ;;  %371 = vst [vmem:[%s657_s8 + $0x2e] sm:$0x3] %v370_v12  ;;  %v382_v16 = vld [vmem:[%s643_s27 + $0x16] sm:$0x3] }
  0x16   : > { %374 = vst [vmem:[%s657_s8 + $0x34] sm:$0x3] %v373_v13  ;;  %377 = vst [vmem:[%s657_s8 + $0x3a] sm:$0x3] %v376_v14  ;;  %v385_v17 = vld [vmem:[%s643_s27 + $0x18] sm:$0x3] }
  0x17   : > { %380 = vst [vmem:[%s657_s8 + $0x40] sm:$0x3] %v379_v15  ;;  %383 = vst [vmem:[%s657_s8 + $0x46] sm:$0x3] %v382_v16  ;;  %v388_v18 = vld [vmem:[%s643_s27 + $0x1a] sm:$0x3] }
  0x18   : > { %v391_v19 = vld [vmem:[%s643_s27 + $0x1c] sm:$0x3]  ;;  %386 = vst [vmem:[%s657_s8 + $0x4c] sm:$0x3] %v385_v17  ;;  %389 = vst [vmem:[%s657_s8 + $0x52] sm:$0x3] %v388_v18 }
  0x19   : > { %392 = vst [vmem:[%s657_s8 + $0x58] sm:$0x3] %v391_v19  ;;  %v394_v20 = vld [vmem:[%s643_s27 + $0x1e] sm:$0x3] }
  0x1a   : > { %395 = vst [vmem:[%s657_s8 + $0x5e] sm:$0x3] %v394_v20 }
  0xd4   : > { %v529_v21 = vpop.f32.mrf.mxu0  ;;  %v533_v22 = vpop.f32.mrf.mxu1 }
  0xd5   : > { %360 = vst [vmem:[%s657_s8 + $0x18] sm:$0xf] %v529_v21  ;;  %363 = vst [vmem:[%s657_s8 + $0x1a] sm:$0xf0] %v529_v21 }
  0xd6   : > { %384 = vst [vmem:[%s657_s8 + $0x48] sm:$0xf] %v533_v22  ;;  %387 = vst [vmem:[%s657_s8 + $0x4a] sm:$0xf0] %v533_v22  ;;  %v317_v23 = vpop.f32.mrf.mxu0  ;;  %v333_v24 = vpop.f32.mrf.mxu1 }
  0xd7   : > { %348 = vst [vmem:[%s657_s8] sm:$0xf] %v317_v23  ;;  %351 = vst [vmem:[%s657_s8 + $0x2] sm:$0xf0] %v317_v23 }
  0xd8   : > { %372 = vst [vmem:[%s657_s8 + $0x30] sm:$0xf] %v333_v24  ;;  %375 = vst [vmem:[%s657_s8 + $0x32] sm:$0xf0] %v333_v24  ;;  %v530_v25 = vpop.f32.mrf.mxu0  ;;  %v534_v26 = vpop.f32.mrf.mxu1 }
  0xd9   : > { %366 = vst [vmem:[%s657_s8 + $0x24] sm:$0xf] %v530_v25  ;;  %369 = vst [vmem:[%s657_s8 + $0x26] sm:$0xf0] %v530_v25 }
  0xda   : > { %390 = vst [vmem:[%s657_s8 + $0x54] sm:$0xf] %v534_v26  ;;  %393 = vst [vmem:[%s657_s8 + $0x56] sm:$0xf0] %v534_v26  ;;  %v320_v27 = vpop.f32.mrf.mxu0  ;;  %v336_v28 = vpop.f32.mrf.mxu1 }
  0xdb   : > { %354 = vst [vmem:[%s657_s8 + $0xc] sm:$0xf] %v320_v27  ;;  %357 = vst [vmem:[%s657_s8 + $0xe] sm:$0xf0] %v320_v27 }
  0xdc   : > { %378 = vst [vmem:[%s657_s8 + $0x3c] sm:$0xf] %v336_v28  ;;  %381 = vst [vmem:[%s657_s8 + $0x3e] sm:$0xf0] %v336_v28 }
  0xdd PF: > { %s13_s14 = sadd.s32 1, %s589_s14   ;;  %s719_s12 = smov %s585_s13 }
  0xde   : > { %p10_p5 = scmp.ge.s32.totalorder %s13_s14, 4   ;;  %s720_s13 = smov %s722_s15 }
  0xe0   :  { %12 = sbr.rel (!%p10_p5) target bundleno = 2 (0x2), region = 65 }

</bundles_post_ra>
